<compile_context>
chip_gen: v7x
topology: tpu7x:2x2x1
jax: 0.10.0
libtpu: 0.0.40
codegen_flags: <defaults>
</compile_context>

<pallas_src>
import numpy as np
import jax
import jax.numpy as jnp
from jax import lax
from jax.experimental import pallas as pl
from jax.experimental.pallas import tpu as pltpu

KH = KW = 4       # conv kernel size (weight.shape[2:])
C_OUT = 4         # number of fixed filters
POOL = 4          # MaxPool2d(4, 4)


def net_forward(x_nchw, weight):
    """x_nchw: (N, 1, H, W) f32; weight: (4, 1, 4, 4) f32.
    Returns (conv_x, activated_x, pooled_x) in NCHW, matching the PyTorch Net."""
    n, c, h, w = x_nchw.shape
    assert c == 1 and weight.shape == (C_OUT, 1, KH, KW)
    ho, wo = h - KH + 1, w - KW + 1            # valid conv, stride 1
    hp, wp = ho // POOL, wo // POOL            # MaxPool2d(4,4), floor
    rows = C_OUT * n                           # folded sublane axis

    # Flat (row-major, full-width) layout constants.
    L = ho * w                                  # flat conv slab width (lane-dense)
    pad_len = L + (KH - 1) * w + (KW - 1)       # input length touched by the taps
    wm_len = POOL * (hp - 1) * w + POOL * (wp - 1) + 1   # window-max positions needed
    h_len = wm_len + (POOL - 1) * w             # stage-1 (column-max) length

    # ---- wrapper-side layout plumbing (inputs) ----
    # Flattened + zero-padded image, replicated across the C_OUT sublane groups
    # so the whole conv runs on dense (rows, L) values; per-tap weights become a
    # per-sublane column so one broadcast-multiply serves all channels+batches.
    x_flat = x_nchw[:, 0].reshape(n, h * w).astype(jnp.float32)
    x_flat = jnp.pad(x_flat, ((0, 0), (0, pad_len - h * w)))
    x_stack = jnp.broadcast_to(x_flat[None], (C_OUT, n, pad_len)).reshape(rows, pad_len)
    # w_cols[oc*n + b, t] = weight[oc, 0, t//KW, t%KW]
    w_cols = jnp.repeat(weight.astype(jnp.float32).reshape(C_OUT, KH * KW), n, axis=0)

    def kernel(w_ref, x_ref, conv_ref, wmax_ref):
        # w_ref    : VMEM (rows, KH*KW) f32, per-sublane tap weights
        # x_ref    : VMEM (rows, pad_len) f32, flattened row-major image (zero padded,
        #            replicated across the C_OUT sublane groups)
        # conv_ref : VMEM (rows, L) f32       (full-width rows; cols >= wo are wrap
        #            garbage, cropped in the wrapper)
        # wmax_ref : VMEM (rows, wm_len) f32  (shift-and-max slab; pooled values live
        #            at flat positions POOL*i*w + POOL*j, picked in the wrapper)
        x = x_ref[...]                                       # (rows, pad_len): 3 vregs

        # -- conv: one straight-line FMA region on the VPU; one live tap at a time --
        acc = jnp.zeros((rows, L), jnp.float32)              # (8, 208): 2 dense vregs
        for kh in range(KH):
            for kw in range(KW):
                t = kh * KW + kw
                off = kh * w + kw
                # (rows,1) per-sublane weight column * (rows,L) shifted tap view.
                acc = acc + w_ref[:, t:t + 1] * x[:, off:off + L]
        conv_ref[...] = acc                                   # single full vst

        # -- MaxPool2d(4,4): concat-free shift-and-max on the flat lane axis --
        act = jnp.maximum(acc, 0.0)                           # ReLU feeding the pool
        hmax = act[:, 0:h_len]
        for kc in range(1, POOL):                             # max over 4 adjacent cols
            hmax = jnp.maximum(hmax, act[:, kc:kc + h_len])
        wmax = hmax[:, 0:wm_len]
        for kr in range(1, POOL):                             # max over 4 adjacent rows
            wmax = jnp.maximum(wmax, hmax[:, kr * w:kr * w + wm_len])
        wmax_ref[...] = wmax                                  # single full vst

    conv_slab, wmax_slab = pl.pallas_call(
        kernel,
        out_shape=(
            jax.ShapeDtypeStruct((rows, L), jnp.float32),
            jax.ShapeDtypeStruct((rows, wm_len), jnp.float32),
        ),
        in_specs=[
            pl.BlockSpec(memory_space=pltpu.MemorySpace.VMEM),   # per-sublane weights
            pl.BlockSpec(memory_space=pltpu.MemorySpace.VMEM),   # flat/padded/replicated input
        ],
        out_specs=(
            pl.BlockSpec(memory_space=pltpu.MemorySpace.VMEM),
            pl.BlockSpec(memory_space=pltpu.MemorySpace.VMEM),
        ),
    )(w_cols, x_stack)

    # ---- wrapper-side layout plumbing (outputs) ----
    # conv: crop the wrap columns, unfold (C_OUT, N) from the sublane axis.
    conv = conv_slab.reshape(C_OUT, n, ho, w)[:, :, :, :wo].transpose(1, 0, 2, 3)
    # activated_x = relu(conv_x): computed on the cropped conv (fuses in XLA).
    act = jnp.maximum(conv, 0.0)
    # pool: pooled value (i, j) sits at flat position POOL*i*w + POOL*j of wmax.
    # Pad to hp blocks of POOL*w, reshape, and take a plain strided slice.
    padded = jnp.pad(wmax_slab, ((0, 0), (0, hp * POOL * w - wm_len)))
    pool = (padded.reshape(C_OUT, n, hp, POOL * w)[:, :, :, 0:POOL * wp:POOL]
            .transpose(1, 0, 2, 3))
    return conv, act, pool


def net_reference(x_nchw, weight):
    conv = lax.conv_general_dilated(
        x_nchw, weight, window_strides=(1, 1), padding="VALID",
        dimension_numbers=("NCHW", "OIHW", "NCHW"))
    act = jnp.maximum(conv, 0.0)
    pool = lax.reduce_window(
        act, -jnp.inf, lax.max,
        window_dimensions=(1, 1, POOL, POOL),
        window_strides=(1, 1, POOL, POOL),
        padding="VALID")
    return conv, act, pool


if __name__ == "__main__":
    # Deterministic weights exactly as in the PyTorch script.
    filter_vals = np.array([[-1, -1, 1, 1]] * 4, dtype=np.float32)
    filter_1 = filter_vals
    filter_2 = -filter_1
    filter_3 = filter_1.T
    filter_4 = -filter_3
    filters = np.stack([filter_1, filter_2, filter_3, filter_4])      # (4, 4, 4)
    weight = jnp.asarray(filters[:, None, :, :], dtype=jnp.float32)   # (4, 1, 4, 4)

    # Deterministic input, NCHW with 1 channel (what the module expects).
    key = jax.random.PRNGKey(0)
    x = jax.random.normal(key, (2, 1, 16, 16), dtype=jnp.float32)

    conv_x, act_x, pool_x = net_forward(x, weight)
    jax.block_until_ready((conv_x, act_x, pool_x))

    conv_r, act_r, pool_r = net_reference(x, weight)
    assert conv_x.shape == (2, 4, 13, 13) and act_x.shape == (2, 4, 13, 13)
    assert pool_x.shape == (2, 4, 3, 3)
    np.testing.assert_allclose(np.asarray(conv_x), np.asarray(conv_r), rtol=1e-5, atol=1e-5)
    np.testing.assert_allclose(np.asarray(act_x), np.asarray(act_r), rtol=1e-5, atol=1e-5)
    np.testing.assert_allclose(np.asarray(pool_x), np.asarray(pool_r), rtol=1e-5, atol=1e-5)

    print("KERNEL_OK")
</pallas_src>

<mosaic_0001>
module attributes {stable_mosaic.version = 11 : i64} {
  func.func @kernel(%arg0: memref<8x16xf32, #tpu.memory_space<vmem>>, %arg1: memref<8x259xf32, #tpu.memory_space<vmem>>, %arg2: memref<8x208xf32, #tpu.memory_space<vmem>>, %arg3: memref<8x137xf32, #tpu.memory_space<vmem>>) attributes {dimension_semantics = [], scalar_prefetch = 0 : i64, scratch_operands = 0 : i64, tpu.core_type = #tpu.core_type<tc>} {
    %c0 = arith.constant 0 : index
    %c0_0 = arith.constant 0 : index
    %0 = vector.load %arg1[%c0, %c0_0] : memref<8x259xf32, #tpu.memory_space<vmem>>, vector<8x259xf32>
    %cst = arith.constant 0.000000e+00 : f32
    %1 = vector.broadcast %cst : f32 to vector<8x208xf32>
    %c0_1 = arith.constant 0 : index
    %c0_2 = arith.constant 0 : index
    %2 = vector.load %arg0[%c0_1, %c0_2] : memref<8x16xf32, #tpu.memory_space<vmem>>, vector<8x1xf32>
    %3 = vector.extract_strided_slice %0 {offsets = [0, 0], sizes = [8, 208], strides = [1, 1]} : vector<8x259xf32> to vector<8x208xf32>
    %4 = vector.broadcast %2 : vector<8x1xf32> to vector<8x208xf32>
    %5 = arith.mulf %4, %3 : vector<8x208xf32>
    %6 = arith.addf %1, %5 : vector<8x208xf32>
    %c0_3 = arith.constant 0 : index
    %c1 = arith.constant 1 : index
    %7 = vector.load %arg0[%c0_3, %c1] : memref<8x16xf32, #tpu.memory_space<vmem>>, vector<8x1xf32>
    %8 = vector.extract_strided_slice %0 {offsets = [0, 1], sizes = [8, 208], strides = [1, 1]} : vector<8x259xf32> to vector<8x208xf32>
    %9 = vector.broadcast %7 : vector<8x1xf32> to vector<8x208xf32>
    %10 = arith.mulf %9, %8 : vector<8x208xf32>
    %11 = arith.addf %6, %10 : vector<8x208xf32>
    %c0_4 = arith.constant 0 : index
    %c2 = arith.constant 2 : index
    %12 = vector.load %arg0[%c0_4, %c2] : memref<8x16xf32, #tpu.memory_space<vmem>>, vector<8x1xf32>
    %13 = vector.extract_strided_slice %0 {offsets = [0, 2], sizes = [8, 208], strides = [1, 1]} : vector<8x259xf32> to vector<8x208xf32>
    %14 = vector.broadcast %12 : vector<8x1xf32> to vector<8x208xf32>
    %15 = arith.mulf %14, %13 : vector<8x208xf32>
    %16 = arith.addf %11, %15 : vector<8x208xf32>
    %c0_5 = arith.constant 0 : index
    %c3 = arith.constant 3 : index
    %17 = vector.load %arg0[%c0_5, %c3] : memref<8x16xf32, #tpu.memory_space<vmem>>, vector<8x1xf32>
    %18 = vector.extract_strided_slice %0 {offsets = [0, 3], sizes = [8, 208], strides = [1, 1]} : vector<8x259xf32> to vector<8x208xf32>
    %19 = vector.broadcast %17 : vector<8x1xf32> to vector<8x208xf32>
    %20 = arith.mulf %19, %18 : vector<8x208xf32>
    %21 = arith.addf %16, %20 : vector<8x208xf32>
    %c0_6 = arith.constant 0 : index
    %c4 = arith.constant 4 : index
    %22 = vector.load %arg0[%c0_6, %c4] : memref<8x16xf32, #tpu.memory_space<vmem>>, vector<8x1xf32>
    %23 = vector.extract_strided_slice %0 {offsets = [0, 16], sizes = [8, 208], strides = [1, 1]} : vector<8x259xf32> to vector<8x208xf32>
    %24 = vector.broadcast %22 : vector<8x1xf32> to vector<8x208xf32>
    %25 = arith.mulf %24, %23 : vector<8x208xf32>
    %26 = arith.addf %21, %25 : vector<8x208xf32>
    %c0_7 = arith.constant 0 : index
    %c5 = arith.constant 5 : index
    %27 = vector.load %arg0[%c0_7, %c5] : memref<8x16xf32, #tpu.memory_space<vmem>>, vector<8x1xf32>
    %28 = vector.extract_strided_slice %0 {offsets = [0, 17], sizes = [8, 208], strides = [1, 1]} : vector<8x259xf32> to vector<8x208xf32>
    %29 = vector.broadcast %27 : vector<8x1xf32> to vector<8x208xf32>
    %30 = arith.mulf %29, %28 : vector<8x208xf32>
    %31 = arith.addf %26, %30 : vector<8x208xf32>
    %c0_8 = arith.constant 0 : index
    %c6 = arith.constant 6 : index
    %32 = vector.load %arg0[%c0_8, %c6] : memref<8x16xf32, #tpu.memory_space<vmem>>, vector<8x1xf32>
    %33 = vector.extract_strided_slice %0 {offsets = [0, 18], sizes = [8, 208], strides = [1, 1]} : vector<8x259xf32> to vector<8x208xf32>
    %34 = vector.broadcast %32 : vector<8x1xf32> to vector<8x208xf32>
    %35 = arith.mulf %34, %33 : vector<8x208xf32>
    %36 = arith.addf %31, %35 : vector<8x208xf32>
    %c0_9 = arith.constant 0 : index
    %c7 = arith.constant 7 : index
    %37 = vector.load %arg0[%c0_9, %c7] : memref<8x16xf32, #tpu.memory_space<vmem>>, vector<8x1xf32>
    %38 = vector.extract_strided_slice %0 {offsets = [0, 19], sizes = [8, 208], strides = [1, 1]} : vector<8x259xf32> to vector<8x208xf32>
    %39 = vector.broadcast %37 : vector<8x1xf32> to vector<8x208xf32>
    %40 = arith.mulf %39, %38 : vector<8x208xf32>
    %41 = arith.addf %36, %40 : vector<8x208xf32>
    %c0_10 = arith.constant 0 : index
    %c8 = arith.constant 8 : index
    %42 = vector.load %arg0[%c0_10, %c8] : memref<8x16xf32, #tpu.memory_space<vmem>>, vector<8x1xf32>
    %43 = vector.extract_strided_slice %0 {offsets = [0, 32], sizes = [8, 208], strides = [1, 1]} : vector<8x259xf32> to vector<8x208xf32>
    %44 = vector.broadcast %42 : vector<8x1xf32> to vector<8x208xf32>
    %45 = arith.mulf %44, %43 : vector<8x208xf32>
    %46 = arith.addf %41, %45 : vector<8x208xf32>
    %c0_11 = arith.constant 0 : index
    %c9 = arith.constant 9 : index
    %47 = vector.load %arg0[%c0_11, %c9] : memref<8x16xf32, #tpu.memory_space<vmem>>, vector<8x1xf32>
    %48 = vector.extract_strided_slice %0 {offsets = [0, 33], sizes = [8, 208], strides = [1, 1]} : vector<8x259xf32> to vector<8x208xf32>
    %49 = vector.broadcast %47 : vector<8x1xf32> to vector<8x208xf32>
    %50 = arith.mulf %49, %48 : vector<8x208xf32>
    %51 = arith.addf %46, %50 : vector<8x208xf32>
    %c0_12 = arith.constant 0 : index
    %c10 = arith.constant 10 : index
    %52 = vector.load %arg0[%c0_12, %c10] : memref<8x16xf32, #tpu.memory_space<vmem>>, vector<8x1xf32>
    %53 = vector.extract_strided_slice %0 {offsets = [0, 34], sizes = [8, 208], strides = [1, 1]} : vector<8x259xf32> to vector<8x208xf32>
    %54 = vector.broadcast %52 : vector<8x1xf32> to vector<8x208xf32>
    %55 = arith.mulf %54, %53 : vector<8x208xf32>
    %56 = arith.addf %51, %55 : vector<8x208xf32>
    %c0_13 = arith.constant 0 : index
    %c11 = arith.constant 11 : index
    %57 = vector.load %arg0[%c0_13, %c11] : memref<8x16xf32, #tpu.memory_space<vmem>>, vector<8x1xf32>
    %58 = vector.extract_strided_slice %0 {offsets = [0, 35], sizes = [8, 208], strides = [1, 1]} : vector<8x259xf32> to vector<8x208xf32>
    %59 = vector.broadcast %57 : vector<8x1xf32> to vector<8x208xf32>
    %60 = arith.mulf %59, %58 : vector<8x208xf32>
    %61 = arith.addf %56, %60 : vector<8x208xf32>
    %c0_14 = arith.constant 0 : index
    %c12 = arith.constant 12 : index
    %62 = vector.load %arg0[%c0_14, %c12] : memref<8x16xf32, #tpu.memory_space<vmem>>, vector<8x1xf32>
    %63 = vector.extract_strided_slice %0 {offsets = [0, 48], sizes = [8, 208], strides = [1, 1]} : vector<8x259xf32> to vector<8x208xf32>
    %64 = vector.broadcast %62 : vector<8x1xf32> to vector<8x208xf32>
    %65 = arith.mulf %64, %63 : vector<8x208xf32>
    %66 = arith.addf %61, %65 : vector<8x208xf32>
    %c0_15 = arith.constant 0 : index
    %c13 = arith.constant 13 : index
    %67 = vector.load %arg0[%c0_15, %c13] : memref<8x16xf32, #tpu.memory_space<vmem>>, vector<8x1xf32>
    %68 = vector.extract_strided_slice %0 {offsets = [0, 49], sizes = [8, 208], strides = [1, 1]} : vector<8x259xf32> to vector<8x208xf32>
    %69 = vector.broadcast %67 : vector<8x1xf32> to vector<8x208xf32>
    %70 = arith.mulf %69, %68 : vector<8x208xf32>
    %71 = arith.addf %66, %70 : vector<8x208xf32>
    %c0_16 = arith.constant 0 : index
    %c14 = arith.constant 14 : index
    %72 = vector.load %arg0[%c0_16, %c14] : memref<8x16xf32, #tpu.memory_space<vmem>>, vector<8x1xf32>
    %73 = vector.extract_strided_slice %0 {offsets = [0, 50], sizes = [8, 208], strides = [1, 1]} : vector<8x259xf32> to vector<8x208xf32>
    %74 = vector.broadcast %72 : vector<8x1xf32> to vector<8x208xf32>
    %75 = arith.mulf %74, %73 : vector<8x208xf32>
    %76 = arith.addf %71, %75 : vector<8x208xf32>
    %c0_17 = arith.constant 0 : index
    %c15 = arith.constant 15 : index
    %77 = vector.load %arg0[%c0_17, %c15] : memref<8x16xf32, #tpu.memory_space<vmem>>, vector<8x1xf32>
    %78 = vector.extract_strided_slice %0 {offsets = [0, 51], sizes = [8, 208], strides = [1, 1]} : vector<8x259xf32> to vector<8x208xf32>
    %79 = vector.broadcast %77 : vector<8x1xf32> to vector<8x208xf32>
    %80 = arith.mulf %79, %78 : vector<8x208xf32>
    %81 = arith.addf %76, %80 : vector<8x208xf32>
    %c0_18 = arith.constant 0 : index
    %c0_19 = arith.constant 0 : index
    %82 = vector.load %arg2[%c0_18, %c0_19] : memref<8x208xf32, #tpu.memory_space<vmem>>, vector<8x208xf32>
    tpu.vector_store %arg2[%c0_18, %c0_19], %81 {strides = array<i32>} : memref<8x208xf32, #tpu.memory_space<vmem>>, vector<8x208xf32>,
    %cst_20 = arith.constant 0.000000e+00 : f32
    %83 = vector.broadcast %cst_20 : f32 to vector<8x208xf32>
    %84 = arith.maximumf %81, %83 : vector<8x208xf32>
    %85 = vector.extract_strided_slice %84 {offsets = [0, 0], sizes = [8, 185], strides = [1, 1]} : vector<8x208xf32> to vector<8x185xf32>
    %86 = vector.extract_strided_slice %84 {offsets = [0, 1], sizes = [8, 185], strides = [1, 1]} : vector<8x208xf32> to vector<8x185xf32>
    %87 = arith.maximumf %85, %86 : vector<8x185xf32>
    %88 = vector.extract_strided_slice %84 {offsets = [0, 2], sizes = [8, 185], strides = [1, 1]} : vector<8x208xf32> to vector<8x185xf32>
    %89 = arith.maximumf %87, %88 : vector<8x185xf32>
    %90 = vector.extract_strided_slice %84 {offsets = [0, 3], sizes = [8, 185], strides = [1, 1]} : vector<8x208xf32> to vector<8x185xf32>
    %91 = arith.maximumf %89, %90 : vector<8x185xf32>
    %92 = vector.extract_strided_slice %91 {offsets = [0, 0], sizes = [8, 137], strides = [1, 1]} : vector<8x185xf32> to vector<8x137xf32>
    %93 = vector.extract_strided_slice %91 {offsets = [0, 16], sizes = [8, 137], strides = [1, 1]} : vector<8x185xf32> to vector<8x137xf32>
    %94 = arith.maximumf %92, %93 : vector<8x137xf32>
    %95 = vector.extract_strided_slice %91 {offsets = [0, 32], sizes = [8, 137], strides = [1, 1]} : vector<8x185xf32> to vector<8x137xf32>
    %96 = arith.maximumf %94, %95 : vector<8x137xf32>
    %97 = vector.extract_strided_slice %91 {offsets = [0, 48], sizes = [8, 137], strides = [1, 1]} : vector<8x185xf32> to vector<8x137xf32>
    %98 = arith.maximumf %96, %97 : vector<8x137xf32>
    %c0_21 = arith.constant 0 : index
    %c0_22 = arith.constant 0 : index
    %99 = vector.load %arg3[%c0_21, %c0_22] : memref<8x137xf32, #tpu.memory_space<vmem>>, vector<8x137xf32>
    tpu.vector_store %arg3[%c0_21, %c0_22], %98 {strides = array<i32>} : memref<8x137xf32, #tpu.memory_space<vmem>>, vector<8x137xf32>,
    return
  }
}

</mosaic_0001>

<bundles_post_ra>
// kernel: tpu_custom_call.1
= control target key start
LH: loop header
LB: loop body
LE: loop exit
PB: predicated region body
PF: predicated region fallthrough
CT: control target
= control target key end

     0   :  { %9 = vsyncpa [#allocation3], 0  ;;  %s757_s0 = inlined_call_operand.hbm [shape: f32[8,16], index: 0, kind: input, shape index: {}]   ;;  %s758_s1 = inlined_call_operand.hbm [shape: f32[8,259], index: 1, kind: input, shape index: {}]   ;;  %s759_s2 = inlined_call_operand.hbm [shape: f32[8,208], index: 2, kind: output, shape index: {0}]   ;;  %s760_s3 = inlined_call_operand.hbm [shape: f32[8,137], index: 3, kind: output, shape index: {1}]  }
   0x1   :  { %10 = vsyncpa [#allocation6], 0 }
   0x2   :  { %11 = vsyncpa [#allocation4], 0 }
   0x3   :  { %12 = vsyncpa [#allocation9], 0  ;;  %s579_s12 = smov [#allocation2]   ;;  %s580_s14 = smov [#allocation5]  }
   0x4   :  { %s19_s13 = sshll.u32 %s579_s12, 4  ;;  %s29_s15 = sshll.u32 %s580_s14, 4  ;;  %s20_s13 = int_to_ptr.vmem [resolvable:$true] %s19_s13  ;;  %s30_s15 = int_to_ptr.vmem [resolvable:$true] %s29_s15 }
   0x5   :  { %s483_s18 = scalar_lea.hbm %s757_s0, 128 }
   0x6   :  { %p484_p0 = scmp.ne.s32.totalorder %s757_s0, %s483_s18  ;;  %p487_p1 = scmp.lt.u32.totalorder %s483_s18, %s757_s0 }
   0x8   :  { %p489_p2 = pnand %p487_p1, %p484_p0 }
   0xa   :  { %492 = shalt.err (!%p489_p2)
}
   0xb   :  { %s493_s23 = scalar_lea.vmem %s20_s13, 128  ;;  %p498_p4 = scmp.lt.s32.totalorder %s20_s13, %s20_s13 }
   0xc   :  { %p494_p3 = scmp.ne.s32.totalorder %s20_s13, %s493_s23  ;;  %p499_p5 = scmp.lt.s32.totalorder %s493_s23, %s493_s23 }
   0xe   :  { %p500_p6 = por %p499_p5, %p498_p4 }
  0x10   :  { %p501_p7 = pnand %p500_p6, %p494_p3 }
  0x12   :  { %504 = shalt.err (!%p501_p7)
}
  0x13   :  { %22 = dma.hbm_to_vmem [thread:$0]  %s757_s0, 128, %s20_s13, [#allocation3]  }
  0x14   :  { %s505_s28 = scalar_lea.hbm %s758_s1, 384 }
  0x15   :  { %p506_p8 = scmp.ne.s32.totalorder %s758_s1, %s505_s28  ;;  %p509_p9 = scmp.lt.u32.totalorder %s505_s28, %s758_s1 }
  0x17   :  { %p511_p10 = pnand %p509_p9, %p506_p8 }
  0x19   :  { %514 = shalt.err (!%p511_p10)
}
  0x1a   :  { %s515_s6 = scalar_lea.vmem %s30_s15, 384  ;;  %p520_p12 = scmp.lt.s32.totalorder %s30_s15, %s30_s15 }
  0x1b   :  { %p516_p11 = scmp.ne.s32.totalorder %s30_s15, %s515_s6  ;;  %p521_p13 = scmp.lt.s32.totalorder %s515_s6, %s515_s6 }
  0x1d   :  { %p522_p0 = por %p521_p13, %p520_p12 }
  0x1f   :  { %p523_p1 = pnand %p522_p0, %p516_p11 }
  0x21   :  { %526 = shalt.err (!%p523_p1)
}
  0x22   :  { %32 = dma.hbm_to_vmem [thread:$0]  %s758_s1, 384, %s30_s15, [#allocation6]  }
  0x23   :  { %571 = dma.done.wait [#allocation3], 128  }
  0x24   :  { %572 = vsyncadd [#allocation3], 4294967168 }
  0x25   :  { %573 = dma.done.wait [#allocation6], 384  }
  0x26   :  { %574 = vsyncadd [#allocation6], 4294966912  ;;  %v581_v0 = vmov 1   ;;  %v582_v1 = vmov 3   ;;  %v42_v2 = vld [vmem:[#allocation2] sm:$0xff]  ;;  %v583_v3 = vmov 2  }
  0x27   :  { %467 = vset.pattern.permute.xlu0 %v581_v0  ;;  %469 = vset.pattern.permute.xlu1 %v582_v1  ;;  %v584_v4 = vmov 4   ;;  %v585_v5 = vmov 5   ;;  %v586_v6 = vmov 6   ;;  %v587_v7 = vmov 7   ;;  %v658_v17 = vld [vmem:[#allocation5] sm:$0xff]  ;;  %v660_v18 = vld [vmem:[#allocation5 + $0x8] sm:$0xff] }
  0x28   :  { %53 = vperm.xlu0 %467, %v42_v2   ;;  %89 = vperm.xlu1 %469, %v42_v2   ;;  %v588_v8 = vmov 9   ;;  %v589_v9 = vmov 8   ;;  %v590_v10 = vmov 12   ;;  %v591_v11 = vmov 10   ;;  %s597_s1 = smov 127   ;;  %s598_s8 = smov 126  }
  0x29   :  { %v592_v12 = vmov 15   ;;  %v593_v13 = vmov 11   ;;  %v594_v14 = vmov 13   ;;  %v595_v15 = vmov 14   ;;  %s599_s9 = smov 125   ;;  %s600_s10 = smov 112  }
  0x2a   :  { %v596_v16 = vmov 0   ;;  %s601_s11 = smov 111   ;;  %s602_s12 = smov 110   ;;  %v41_v59 = vld [vmem:[#allocation5 + $0x10] sm:$0xff]  ;;  %vm64_vm0 = vcmask 1039360   ;;  %vm82_vm1 = vcmask 1031168  }
  0x2b   :  { %s603_s13 = smov 109   ;;  %s604_s14 = smov 96   ;;  %vm100_vm2 = vcmask 1022976   ;;  %vm118_vm3 = vcmask 916480   ;;  %vm136_vm4 = vcmask 908288   ;;  %vm154_vm5 = vcmask 900096  }
  0x2c   :  { %468 = vset.pattern.permute.xlu0 %v583_v3  ;;  %470 = vset.pattern.permute.xlu1 %v584_v4  ;;  %s605_s15 = smov 95   ;;  %s606_s16 = smov 94   ;;  %vm172_vm6 = vcmask 891904   ;;  %vm190_vm7 = vcmask 785408   ;;  %vm208_vm8 = vcmask 777216   ;;  %vm226_vm9 = vcmask 769024  }
  0x2d   :  { %71 = vperm.xlu0 %468, %v42_v2   ;;  %107 = vperm.xlu1 %470, %v42_v2   ;;  %s607_s17 = smov 93   ;;  %s608_s18 = smov 80   ;;  %vm244_vm10 = vcmask 760832   ;;  %vm262_vm11 = vcmask 654336   ;;  %vm284_vm12 = vcmask 646144   ;;  %vm307_vm13 = vcmask 637952  }
  0x2e   :  { %s609_s19 = smov 79   ;;  %s610_s20 = smov 78   ;;  %vm330_vm14 = vcmask 629760  }
  0x2f   :  { %s611_s21 = smov 77   ;;  %s612_s22 = smov [#allocation7]  }
  0x30   :  { %s408_s23 = sshll.u32 %s612_s22, 4  ;;  %s409_s23 = int_to_ptr.vmem [resolvable:$true] %s408_s23 }
  0x31   :  { %471 = vset.pattern.permute.xlu1 %v585_v5  ;;  %472 = vset.pattern.permute.xlu0 %v586_v6  ;;  %s527_s24 = scalar_lea.vmem %s409_s23, 256  ;;  %p532_p3 = scmp.lt.s32.totalorder %s409_s23, %s409_s23 }
  0x32   :  { %125 = vperm.xlu1 %471, %v42_v2   ;;  %143 = vperm.xlu0 %472, %v42_v2   ;;  %p528_p2 = scmp.ne.s32.totalorder %s409_s23, %s527_s24  ;;  %p533_p4 = scmp.lt.s32.totalorder %s527_s24, %s527_s24 }
  0x34   :  { %p534_p5 = por %p533_p4, %p532_p3 }
  0x36   :  { %473 = vset.pattern.permute.xlu1 %v587_v7  ;;  %475 = vset.pattern.permute.xlu0 %v588_v8  ;;  %p535_p6 = pnand %p534_p5, %p528_p2 }
  0x37   :  { %161 = vperm.xlu1 %473, %v42_v2   ;;  %197 = vperm.xlu0 %475, %v42_v2  }
  0x3b   :  { %474 = vset.pattern.permute.xlu1 %v589_v9  ;;  %478 = vset.pattern.permute.xlu0 %v590_v10 }
  0x3c   :  { %179 = vperm.xlu1 %474, %v42_v2   ;;  %251 = vperm.xlu0 %478, %v42_v2  }
  0x40   :  { %476 = vset.pattern.permute.xlu1 %v591_v11  ;;  %481 = vset.pattern.permute.xlu0 %v592_v12 }
  0x41   :  { %215 = vperm.xlu1 %476, %v42_v2   ;;  %315 = vperm.xlu0 %481, %v42_v2  }
  0x45   :  { %477 = vset.pattern.permute.xlu1 %v593_v13 }
  0x46   :  { %233 = vperm.xlu1 %477, %v42_v2  }
  0x4a   :  { %479 = vset.pattern.permute.xlu1 %v594_v14 }
  0x4b   :  { %269 = vperm.xlu1 %479, %v42_v2  }
  0x4f   :  { %480 = vset.pattern.permute.xlu1 %v595_v15 }
  0x50   :  { %292 = vperm.xlu1 %480, %v42_v2  }
  0x54   :  { %482 = vset.pattern.permute.xlu1 %v596_v16 }
  0x55   :  { %45 = vperm.xlu1 %482, %v42_v2  }
  0xa7   :  { %v54_v19 = vpop.permute.xlu0 %53  ;;  %v90_v22 = vpop.permute.xlu1 %89 }
  0xa8   :  { %v56_v20 = vmul.f32 %v54_v19, %v658_v17  ;;  %v57_v21 = vmul.f32 %v54_v19, %v660_v18  ;;  %v92_v27 = vmul.f32 %v90_v22, %v658_v17  ;;  %v93_v28 = vmul.f32 %v90_v22, %v660_v18 }
  0xaa   :  { %62 = vrot.lane.b32.xlu0 %v57_v21, %s597_s1  ;;  %60 = vrot.lane.b32.xlu1 %v56_v20, %s597_s1 }
  0xac   :  { %v72_v23 = vpop.permute.xlu0 %71  ;;  %v108_v26 = vpop.permute.xlu1 %107 }
  0xad   :  { %v74_v24 = vmul.f32 %v72_v23, %v658_v17  ;;  %v75_v25 = vmul.f32 %v72_v23, %v660_v18  ;;  %v110_v29 = vmul.f32 %v108_v26, %v658_v17  ;;  %v111_v30 = vmul.f32 %v108_v26, %v660_v18 }
  0xaf   :  { %80 = vrot.lane.b32.xlu0 %v75_v25, %s598_s8  ;;  %78 = vrot.lane.b32.xlu1 %v74_v24, %s598_s8 }
  0xb1   :  { %v126_v31 = vpop.permute.xlu1 %125  ;;  %v144_v34 = vpop.permute.xlu0 %143 }
  0xb2   :  { %v128_v32 = vmul.f32 %v126_v31, %v658_v17  ;;  %v129_v33 = vmul.f32 %v126_v31, %v660_v18  ;;  %v146_v36 = vmul.f32 %v144_v34, %v658_v17  ;;  %v147_v37 = vmul.f32 %v144_v34, %v660_v18 }
  0xb3   :  { %98 = vrot.lane.b32.xlu0 %v93_v28, %s599_s9  ;;  %96 = vrot.lane.b32.xlu1 %v92_v27, %s599_s9 }
  0xb6   :  { %v162_v35 = vpop.permute.xlu1 %161  ;;  %v198_v43 = vpop.permute.xlu0 %197 }
  0xb7   :  { %116 = vrot.lane.b32.xlu0 %v111_v30, %s600_s10  ;;  %114 = vrot.lane.b32.xlu1 %v110_v29, %s600_s10  ;;  %v164_v38 = vmul.f32 %v162_v35, %v658_v17  ;;  %v165_v39 = vmul.f32 %v162_v35, %v660_v18  ;;  %v200_v45 = vmul.f32 %v198_v43, %v658_v17 }
  0xb8   :  { %v201_v46 = vmul.f32 %v198_v43, %v660_v18 }
  0xbb   :  { %134 = vrot.lane.b32.xlu0 %v129_v33, %s601_s11  ;;  %132 = vrot.lane.b32.xlu1 %v128_v32, %s601_s11  ;;  %v180_v40 = vpop.permute.xlu1 %179  ;;  %v252_v52 = vpop.permute.xlu0 %251 }
  0xbc   :  { %v182_v41 = vmul.f32 %v180_v40, %v658_v17  ;;  %v183_v42 = vmul.f32 %v180_v40, %v660_v18  ;;  %v254_v54 = vmul.f32 %v252_v52, %v658_v17  ;;  %v255_v55 = vmul.f32 %v252_v52, %v660_v18 }
  0xbf   :  { %152 = vrot.lane.b32.xlu0 %v147_v37, %s602_s12  ;;  %150 = vrot.lane.b32.xlu1 %v146_v36, %s602_s12 }
  0xc0   :  { %v216_v44 = vpop.permute.xlu1 %215  ;;  %v316_v0 = vpop.permute.xlu0 %315 }
  0xc1   :  { %v218_v47 = vmul.f32 %v216_v44, %v658_v17  ;;  %v219_v48 = vmul.f32 %v216_v44, %v660_v18  ;;  %v318_v1 = vmul.f32 %v316_v0, %v658_v17  ;;  %v319_v2 = vmul.f32 %v316_v0, %v660_v18 }
  0xc2   :  { %v320_v3 = vmul.f32 %v316_v0, %v41_v59 }
  0xc3   :  { %170 = vrot.lane.b32.xlu0 %v165_v39, %s603_s13  ;;  %168 = vrot.lane.b32.xlu1 %v164_v38, %s603_s13 }
  0xc5   :  { %v234_v49 = vpop.permute.xlu1 %233 }
  0xc6   :  { %v236_v50 = vmul.f32 %v234_v49, %v658_v17  ;;  %v237_v51 = vmul.f32 %v234_v49, %v660_v18 }
  0xc7   :  { %188 = vrot.lane.b32.xlu0 %v183_v42, %s604_s14  ;;  %186 = vrot.lane.b32.xlu1 %v182_v41, %s604_s14 }
  0xca   :  { %v270_v53 = vpop.permute.xlu1 %269 }
  0xcb   :  { %206 = vrot.lane.b32.xlu0 %v201_v46, %s605_s15  ;;  %204 = vrot.lane.b32.xlu1 %v200_v45, %s605_s15  ;;  %v272_v56 = vmul.f32 %v270_v53, %v658_v17  ;;  %v273_v57 = vmul.f32 %v270_v53, %v660_v18  ;;  %v274_v61 = vmul.f32 %v270_v53, %v41_v59 }
  0xcf   :  { %224 = vrot.lane.b32.xlu0 %v219_v48, %s606_s16  ;;  %222 = vrot.lane.b32.xlu1 %v218_v47, %s606_s16  ;;  %v293_v58 = vpop.permute.xlu1 %292 }
  0xd0   :  { %v295_v60 = vmul.f32 %v293_v58, %v658_v17  ;;  %v296_v62 = vmul.f32 %v293_v58, %v660_v18  ;;  %v297_v63 = vmul.f32 %v293_v58, %v41_v59 }
  0xd3   :  { %242 = vrot.lane.b32.xlu0 %v237_v51, %s607_s17  ;;  %240 = vrot.lane.b32.xlu1 %v236_v50, %s607_s17 }
  0xd4   :  { %v46_v4 = vpop.permute.xlu1 %45 }
  0xd5   :  { %v48_v24 = vmul.f32 %v46_v4, %v658_v17  ;;  %v49_v28 = vmul.f32 %v46_v4, %v660_v18 }
  0xd7   :  { %260 = vrot.lane.b32.xlu0 %v255_v55, %s608_s18  ;;  %258 = vrot.lane.b32.xlu1 %v254_v54, %s608_s18 }
  0xdb   :  { %280 = vrot.lane.b32.xlu0 %v273_v57, %s609_s19  ;;  %278 = vrot.lane.b32.xlu1 %v272_v56, %s609_s19 }
  0xdf   :  { %301 = vrot.lane.b32.xlu0 %v295_v60, %s610_s20  ;;  %282 = vrot.lane.b32.xlu1 %v274_v61, %s609_s19 }
  0xe3   :  { %305 = vrot.lane.b32.xlu0 %v297_v63, %s610_s20  ;;  %303 = vrot.lane.b32.xlu1 %v296_v62, %s610_s20 }
  0xe7   :  { %326 = vrot.lane.b32.xlu0 %v319_v2, %s611_s21  ;;  %324 = vrot.lane.b32.xlu1 %v318_v1, %s611_s21 }
  0xeb   :  { %328 = vrot.lane.b32.xlu1 %v320_v3, %s611_s21 }
 0x11c   :  { %v63_v5 = vpop.permute.xlu0 %62  ;;  %v61_v6 = vpop.permute.xlu1 %60 }
 0x11d   :  { %v65_v23 = vsel %vm64_vm0, %v61_v6, %v63_v5  ;;  %v69_v35 = vadd.f32 %v63_v5, %v49_v28 }
 0x11e   :  { %v68_v29 = vadd.f32 %v65_v23, %v48_v24 }
 0x121   :  { %v81_v7 = vpop.permute.xlu0 %80  ;;  %v79_v8 = vpop.permute.xlu1 %78 }
 0x122   :  { %v83_v27 = vsel %vm82_vm1, %v79_v8, %v81_v7  ;;  %v87_v37 = vadd.f32 %v81_v7, %v69_v35 }
 0x123   :  { %v86_v31 = vadd.f32 %v83_v27, %v68_v29 }
 0x125   :  { %v99_v9 = vpop.permute.xlu0 %98  ;;  %v97_v10 = vpop.permute.xlu1 %96 }
 0x126   :  { %v101_v30 = vsel %vm100_vm2, %v97_v10, %v99_v9  ;;  %v105_v41 = vadd.f32 %v99_v9, %v87_v37 }
 0x127   :  { %v104_v36 = vadd.f32 %v101_v30, %v86_v31 }
 0x129   :  { %v117_v11 = vpop.permute.xlu0 %116  ;;  %v115_v12 = vpop.permute.xlu1 %114 }
 0x12a   :  { %v119_v34 = vsel %vm118_vm3, %v115_v12, %v117_v11  ;;  %v123_v44 = vadd.f32 %v117_v11, %v105_v41 }
 0x12b   :  { %v122_v38 = vadd.f32 %v119_v34, %v104_v36 }
 0x12d   :  { %v135_v13 = vpop.permute.xlu0 %134  ;;  %v133_v14 = vpop.permute.xlu1 %132 }
 0x12e   :  { %v137_v17 = vsel %vm136_vm4, %v133_v14, %v135_v13  ;;  %v141_v49 = vadd.f32 %v135_v13, %v123_v44 }
 0x12f   :  { %v140_v42 = vadd.f32 %v137_v17, %v122_v38 }
 0x131   :  { %v153_v15 = vpop.permute.xlu0 %152  ;;  %v151_v16 = vpop.permute.xlu1 %150 }
 0x132   :  { %v155_v18 = vsel %vm154_vm5, %v151_v16, %v153_v15  ;;  %v159_v52 = vadd.f32 %v153_v15, %v141_v49 }
 0x133   :  { %v158_v45 = vadd.f32 %v155_v18, %v140_v42 }
 0x135   :  { %v171_v19 = vpop.permute.xlu0 %170  ;;  %v169_v20 = vpop.permute.xlu1 %168 }
 0x136   :  { %v173_v43 = vsel %vm172_vm6, %v169_v20, %v171_v19  ;;  %v177_v57 = vadd.f32 %v171_v19, %v159_v52 }
 0x137   :  { %v176_v50 = vadd.f32 %v173_v43, %v158_v45 }
 0x139   :  { %v189_v21 = vpop.permute.xlu0 %188  ;;  %v187_v22 = vpop.permute.xlu1 %186 }
 0x13a   :  { %v191_v48 = vsel %vm190_vm7, %v187_v22, %v189_v21  ;;  %v195_v60 = vadd.f32 %v189_v21, %v177_v57 }
 0x13b   :  { %v194_v53 = vadd.f32 %v191_v48, %v176_v50 }
 0x13d   :  { %v207_v25 = vpop.permute.xlu0 %206  ;;  %v205_v26 = vpop.permute.xlu1 %204 }
 0x13e   :  { %v209_v51 = vsel %vm208_vm8, %v205_v26, %v207_v25  ;;  %v213_v1 = vadd.f32 %v207_v25, %v195_v60 }
 0x13f   :  { %v212_v58 = vadd.f32 %v209_v51, %v194_v53 }
 0x141   :  { %v225_v32 = vpop.permute.xlu0 %224  ;;  %v223_v33 = vpop.permute.xlu1 %222 }
 0x142   :  { %v227_v56 = vsel %vm226_vm9, %v223_v33, %v225_v32  ;;  %v231_v4 = vadd.f32 %v225_v32, %v213_v1 }
 0x143   :  { %v230_v61 = vadd.f32 %v227_v56, %v212_v58 }
 0x145   :  { %v243_v39 = vpop.permute.xlu0 %242  ;;  %v241_v40 = vpop.permute.xlu1 %240 }
 0x146   :  { %v245_v59 = vsel %vm244_vm10, %v241_v40, %v243_v39  ;;  %v249_v9 = vadd.f32 %v243_v39, %v231_v4 }
 0x147   :  { %v248_v2 = vadd.f32 %v245_v59, %v230_v61 }
 0x149   :  { %v261_v46 = vpop.permute.xlu0 %260  ;;  %v259_v47 = vpop.permute.xlu1 %258 }
 0x14a   :  { %v263_v0 = vsel %vm262_vm11, %v259_v47, %v261_v46  ;;  %v267_v12 = vadd.f32 %v261_v46, %v249_v9 }
 0x14b   :  { %v266_v5 = vadd.f32 %v263_v0, %v248_v2 }
 0x14d   :  { %v281_v54 = vpop.permute.xlu0 %280  ;;  %v279_v55 = vpop.permute.xlu1 %278 }
 0x14e   :  { %v285_v3 = vsel %vm284_vm12, %v279_v55, %v281_v54 }
 0x14f   :  { %v289_v10 = vadd.f32 %v285_v3, %v266_v5 }
 0x151   :  { %v302_v62 = vpop.permute.xlu0 %301  ;;  %v283_v63 = vpop.permute.xlu1 %282 }
 0x152   :  { %v286_v11 = vsel %vm284_vm12, %v281_v54, %v283_v63 }
 0x153   :  { %v290_v20 = vadd.f32 %v286_v11, %v267_v12 }
 0x155   :  { %v306_v6 = vpop.permute.xlu0 %305  ;;  %v304_v7 = vpop.permute.xlu1 %303 }
 0x156   :  { %v308_v8 = vsel %vm307_vm13, %v302_v62, %v304_v7  ;;  %v309_v16 = vsel %vm307_vm13, %v304_v7, %v306_v6 }
 0x157   :  { %v312_v13 = vadd.f32 %v308_v8, %v289_v10  ;;  %v313_v22 = vadd.f32 %v309_v16, %v290_v20 }
 0x159   :  { %v327_v14 = vpop.permute.xlu0 %326  ;;  %v325_v15 = vpop.permute.xlu1 %324 }
 0x15a   :  { %v331_v19 = vsel %vm330_vm14, %v325_v15, %v327_v14 }
 0x15b   :  { %v335_v21 = vadd.f32 %v331_v19, %v312_v13 }
 0x15d   :  { %v339_v23 = vmax.f32 %v335_v21, 0.0  ;;  %337 = vst [vmem:[#allocation7] sm:$0xff] %v335_v21  ;;  %v329_v24 = vpop.permute.xlu1 %328 }
 0x15e   :  { %v332_v25 = vsel %vm330_vm14, %v327_v14, %v329_v24 }
 0x15f   :  { %v336_v26 = vadd.f32 %v332_v25, %v313_v22  ;;  %343 = vrot.lane.b32.xlu0 %v339_v23, %s597_s1 }
 0x161   :  { %v340_v27 = vmax.f32 %v336_v26, 0.0  ;;  %338 = vst.msk [vmem:[#allocation7 + $0x8] sm:$0xff] %vm262_vm11, %v336_v26 }
 0x163   :  { %345 = vrot.lane.b32.xlu1 %v340_v27, %s597_s1  ;;  %352 = vrot.lane.b32.xlu0 %v339_v23, %s598_s8 }
 0x167   :  { %354 = vrot.lane.b32.xlu1 %v340_v27, %s598_s8  ;;  %361 = vrot.lane.b32.xlu0 %v339_v23, %s599_s9 }
 0x16b   :  { %363 = vrot.lane.b32.xlu1 %v340_v27, %s599_s9 }
 0x1d1   :  { %v344_v28 = vpop.permute.xlu0 %343 }
 0x1d5   :  { %v346_v29 = vpop.permute.xlu1 %345  ;;  %v353_v30 = vpop.permute.xlu0 %352 }
 0x1d6   :  { %v347_v31 = vsel %vm64_vm0, %v344_v28, %v346_v29  ;;  %v351_v33 = vmax.f32 %v340_v27, %v346_v29 }
 0x1d7   :  { %v350_v35 = vmax.f32 %v339_v23, %v347_v31 }
 0x1d9   :  { %v355_v32 = vpop.permute.xlu1 %354  ;;  %v362_v37 = vpop.permute.xlu0 %361 }
 0x1da   :  { %v356_v34 = vsel %vm82_vm1, %v353_v30, %v355_v32  ;;  %v360_v36 = vmax.f32 %v351_v33, %v355_v32 }
 0x1db   :  { %v359_v17 = vmax.f32 %v350_v35, %v356_v34 }
 0x1dd   :  { %v364_v38 = vpop.permute.xlu1 %363 }
 0x1de   :  { %v365_v39 = vsel %vm100_vm2, %v362_v37, %v364_v38  ;;  %v369_v40 = vmax.f32 %v360_v36, %v364_v38 }
 0x1df   :  { %v368_v18 = vmax.f32 %v359_v17, %v365_v39 }
 0x1e0   :  { %374 = vrot.lane.b32.xlu1 %v369_v40, %s600_s10 }
 0x1e1   :  { %538 = shalt.err (!%p535_p6)
}
 0x1e2   :  { %s539_s27 = scalar_lea.hbm %s759_s2, 256 }
 0x1e3   :  { %p540_p7 = scmp.ne.s32.totalorder %s759_s2, %s539_s27  ;;  %p543_p8 = scmp.lt.u32.totalorder %s539_s27, %s759_s2 }
 0x1e5   :  { %p545_p9 = pnand %p543_p8, %p540_p7 }
 0x1e7   :  { %548 = shalt.err (!%p545_p9)
}
 0x1e8   :  { %411 = dma.vmem_to_hbm [thread:$0]  %s409_s23, 256, %s759_s2, [#allocation4]   ;;  %372 = vrot.lane.b32.xlu0 %v368_v18, %s600_s10  ;;  %383 = vrot.lane.b32.xlu1 %v369_v40, %s604_s14  ;;  %vm400_vm15 = vcmask 72704  }
 0x1e9   :  { %s613_s2 = smov [#allocation8]  }
 0x1ea   :  { %s418_s0 = sshll.u32 %s613_s2, 4  ;;  %s419_s0 = int_to_ptr.vmem [resolvable:$true] %s418_s0 }
 0x1eb   :  { %s549_s7 = scalar_lea.vmem %s419_s0, 256  ;;  %p554_p11 = scmp.lt.s32.totalorder %s419_s0, %s419_s0 }
 0x1ec   :  { %381 = vrot.lane.b32.xlu0 %v368_v18, %s604_s14  ;;  %392 = vrot.lane.b32.xlu1 %v369_v40, %s608_s18  ;;  %p550_p10 = scmp.ne.s32.totalorder %s419_s0, %s549_s7  ;;  %p555_p12 = scmp.lt.s32.totalorder %s549_s7, %s549_s7 }
 0x1ee   :  { %p556_p13 = por %p555_p12, %p554_p11 }
 0x1f0   :  { %390 = vrot.lane.b32.xlu0 %v368_v18, %s608_s18  ;;  %p557_p0 = pnand %p556_p13, %p550_p10 }
 0x252   :  { %v375_v41 = vpop.permute.xlu1 %374 }
 0x253   :  { %v380_v45 = vmax.f32 %v369_v40, %v375_v41 }
 0x25a   :  { %v373_v42 = vpop.permute.xlu0 %372  ;;  %v384_v44 = vpop.permute.xlu1 %383 }
 0x25b   :  { %v376_v43 = vsel %vm118_vm3, %v373_v42, %v375_v41  ;;  %v389_v49 = vmax.f32 %v380_v45, %v384_v44 }
 0x25c   :  { %v379_v48 = vmax.f32 %v368_v18, %v376_v43 }
 0x25e   :  { %v382_v46 = vpop.permute.xlu0 %381  ;;  %v393_v50 = vpop.permute.xlu1 %392 }
 0x25f   :  { %v385_v47 = vsel %vm190_vm7, %v382_v46, %v384_v44  ;;  %v398_v52 = vmax.f32 %v389_v49, %v393_v50 }
 0x260   :  { %v388_v51 = vmax.f32 %v379_v48, %v385_v47 }
 0x261   :  { %401 = vst.msk [vmem:[#allocation8 + $0x8] sm:$0xff] %vm400_vm15, %v398_v52 }
 0x262   :  { %v391_v53 = vpop.permute.xlu0 %390 }
 0x263   :  { %v394_v54 = vsel %vm262_vm11, %v391_v53, %v393_v50 }
 0x264   :  { %v397_v55 = vmax.f32 %v388_v51, %v394_v54 }
 0x266   :  { %399 = vst [vmem:[#allocation8] sm:$0xff] %v397_v55 }
 0x267   :  { %560 = shalt.err (!%p557_p0)
}
 0x268   :  { %s561_s9 = scalar_lea.hbm %s760_s3, 256 }
 0x269   :  { %p562_p1 = scmp.ne.s32.totalorder %s760_s3, %s561_s9  ;;  %p565_p2 = scmp.lt.u32.totalorder %s561_s9, %s760_s3 }
 0x26b   :  { %p567_p3 = pnand %p565_p2, %p562_p1 }
 0x26d   :  { %570 = shalt.err (!%p567_p3)
}
 0x26e   :  { %421 = dma.vmem_to_hbm [thread:$0]  %s419_s0, 256, %s760_s3, [#allocation9]  }
 0x26f   :  { %575 = dma.done.wait [#allocation4], 256  }
 0x270   :  { %576 = vsyncadd [#allocation4], 4294967040 }
 0x271   :  { %577 = dma.done.wait [#allocation9], 256  }
 0x272   :  { %578 = vsyncadd [#allocation9], 4294967040 }
 0x273   :  { %428 = vsyncpa [#allocation3], 1 }
 0x274   :  { %429 = vsyncpa [#allocation6], 1 }
 0x275   :  { %430 = vsyncpa [#allocation4], 1 }
 0x276   :  { %431 = vsyncpa [#allocation9], 1 }

</bundles_post_ra>
